<compile_context>
chip_gen: v6e
topology: v6e:2x2x1
jax: 0.10.0
libtpu: 0.0.40
codegen_flags: <defaults>
</compile_context>

<pallas_src>
import math

import jax
import jax.numpy as jnp
import numpy as np
from jax import lax
from jax.experimental import pallas as pl
from jax.experimental.pallas import tpu as pltpu

LANE = 128  # TPU lane width


# ----------------------------- Pallas kernel ------------------------------ #
def _encoder_kernel(x_ref, w1_ref, b1_ref, w2_ref, b2_ref, oT_ref):
    """Fused 2-layer MLP; batch tile stays on the 128-lane axis of the output.

    x_ref  : (tile_b, feat)  batch-major input tile, streamed straight from HBM
    w*_ref : (out, in)       native PyTorch Linear layout, VMEM-resident
    b*_ref : (out, 1)
    oT_ref : (emb, tile_b)   feature-major output tile (lane-dense stores)

    Computes oT = relu(W2 @ relu(W1 @ x^T + b1) + b2) where the W1 @ x^T
    contraction is expressed via dot_general over the feat axes of both
    operands, so no x^T is materialized.
    """
    h = lax.dot_general(
        w1_ref[...], x_ref[...],
        dimension_numbers=(((1,), (1,)), ((), ())),          # contract feat
        preferred_element_type=jnp.float32)                  # (hid, tile_b)
    h = jnp.maximum(h + b1_ref[...], 0.0)
    y = jnp.dot(w2_ref[...], h, preferred_element_type=jnp.float32)
    oT_ref[...] = jnp.maximum(y + b2_ref[...], 0.0).astype(oT_ref.dtype)


def generic_encoder_forward(x, w1, b1, w2, b2, *, tile_b=8192):
    """Fused Sequential(Linear, ReLU, Linear, ReLU) forward.

    x : (B, feat) f32, native batch-major layout (no wrapper transpose/pad).
    w1: (hid, feat), w2: (emb, hid) in PyTorch (out, in) layout.
    b1: (hid,), b2: (emb,).

    Returns the FEATURE-MAJOR activation of shape (emb, B); consumers
    (gnn_block / pooling) should be threaded in this layout — transposing it
    back would cost one extra full HBM read+write of the output.
    """
    B, feat = x.shape
    hid = w1.shape[0]
    emb = w2.shape[0]

    # Lane-aligned batch tile.  Cap it so large batches yield >= 2 grid steps
    # (megacore sharding on v7x); small batches collapse to a single 128-wide
    # step.  Ragged last block: OOB input rows are unspecified but only feed
    # OOB output columns, which Pallas drops on writeback.
    tile_b = max(LANE, (int(tile_b) // LANE) * LANE)
    half_b = pl.cdiv(pl.cdiv(B, 2), LANE) * LANE
    tile_b = min(tile_b, max(LANE, half_b))
    grid = (pl.cdiv(B, tile_b),)

    b1c = b1.reshape(hid, 1)
    b2c = b2.reshape(emb, 1)

    cost = pl.CostEstimate(
        flops=2 * B * (feat * hid + hid * emb),
        transcendentals=0,
        bytes_accessed=4 * (B * (feat + emb)
                            + feat * hid + hid * emb + hid + emb),
    )

    return pl.pallas_call(
        _encoder_kernel,
        out_shape=jax.ShapeDtypeStruct((emb, B), jnp.float32),
        grid=grid,
        in_specs=[
            pl.BlockSpec((tile_b, feat), lambda i: (i, 0)),   # x tile (streamed)
            pl.BlockSpec((hid, feat), lambda i: (0, 0)),      # W1 (VMEM-resident)
            pl.BlockSpec((hid, 1), lambda i: (0, 0)),         # b1
            pl.BlockSpec((emb, hid), lambda i: (0, 0)),       # W2 (VMEM-resident)
            pl.BlockSpec((emb, 1), lambda i: (0, 0)),         # b2
        ],
        out_specs=pl.BlockSpec((emb, tile_b), lambda i: (0, i)),
        compiler_params=pltpu.CompilerParams(
            dimension_semantics=("parallel",),   # batch steps shard across v7x TCs
        ),
        cost_estimate=cost,
    )(x, w1, b1c, w2, b2c)


# ------------------------ deterministic param init ------------------------- #
def _xavier_uniform(key, out_dim, in_dim):
    """torch.nn.init.xavier_uniform_ for a (out, in) weight, gain=1."""
    bound = math.sqrt(6.0 / (in_dim + out_dim))
    return jax.random.uniform(key, (out_dim, in_dim), jnp.float32, -bound, bound)


def build_encoder_params(key, feat_dim, emb_dim, n_layers=2):
    """Generic encoder layer sizing; init per GraphModel.init_emb
    (xavier_uniform weights, biases filled with 0.0)."""
    spread = [min(emb_dim, feat_dim) + abs(feat_dim - emb_dim) * i
              for i in range(n_layers - 1)]
    layer_sizes = [feat_dim] + spread + [emb_dim]
    params = []
    for i in range(n_layers):
        key, kw = jax.random.split(key)
        w = _xavier_uniform(kw, layer_sizes[i + 1], layer_sizes[i])   # (out, in)
        b = jnp.zeros((layer_sizes[i + 1],), jnp.float32)             # bias = 0.0
        params.append((w, b))
    return params, layer_sizes


# ----------------------------------- main ---------------------------------- #
if __name__ == "__main__":
    # Small, module-consistent shapes: a tiny graph's node / edge features.
    NODES, NODE_FEAT = 16, 32
    EDGES, EDGE_FEAT = 24, 16
    EMB, N_LAYERS = 16, 2

    key = jax.random.PRNGKey(0)
    key, kx, ke = jax.random.split(key, 3)
    x = jax.random.normal(kx, (NODES, NODE_FEAT), jnp.float32)
    edge_attr = jax.random.normal(ke, (EDGES, EDGE_FEAT), jnp.float32)

    key, kn = jax.random.split(key)
    node_params, _ = build_encoder_params(kn, NODE_FEAT, EMB, n_layers=N_LAYERS)
    key, kep = jax.random.split(key)
    edge_params, _ = build_encoder_params(kep, EDGE_FEAT, EMB, n_layers=N_LAYERS)

    def run(inp, params):
        (w1, b1), (w2, b2) = params
        return generic_encoder_forward(inp, w1, b1, w2, b2, tile_b=8192)

    # GraphModel.forward first two steps: node_encoder(x), edge_encoder(edge_attr).
    # Kernel outputs are feature-major (EMB, N): that layout is what downstream
    # gnn_block / pooling would consume.
    x_encT = jax.block_until_ready(run(x, node_params))          # (EMB, NODES)
    e_encT = jax.block_until_ready(run(edge_attr, edge_params))  # (EMB, EDGES)

    # Pure-JAX reference: Sequential(Linear, ReLU, Linear, ReLU).
    def ref(inp, params):
        (w1, b1), (w2, b2) = params
        h = jnp.maximum(inp @ w1.T + b1, 0.0)
        return jnp.maximum(h @ w2.T + b2, 0.0)

    np.testing.assert_allclose(np.asarray(x_encT),
                               np.asarray(ref(x, node_params)).T,
                               rtol=1e-5, atol=1e-5)
    np.testing.assert_allclose(np.asarray(e_encT),
                               np.asarray(ref(edge_attr, edge_params)).T,
                               rtol=1e-5, atol=1e-5)

    print("KERNEL_OK")
</pallas_src>

<mosaic_0001>
module attributes {stable_mosaic.version = 11 : i64} {
  func.func @_encoder_kernel(%arg0: i32, %arg1: memref<128x32xf32, #tpu.memory_space<vmem>>, %arg2: memref<16x32xf32, #tpu.memory_space<vmem>>, %arg3: memref<16x1xf32, #tpu.memory_space<vmem>>, %arg4: memref<16x16xf32, #tpu.memory_space<vmem>>, %arg5: memref<16x1xf32, #tpu.memory_space<vmem>>, %arg6: memref<16x128xf32, #tpu.memory_space<vmem>>) attributes {dimension_semantics = [#tpu.dimension_semantics<parallel>], iteration_bounds = array<i64: 1>, scalar_prefetch = 0 : i64, scratch_operands = 0 : i64, tpu.core_type = #tpu.core_type<tc>, window_params = [{transform_indices = @transform_0, window_bounds = array<i64: 128, 32>}, {pipeline_mode = #tpu.pipeline_mode<synchronous>, transform_indices = @transform_1, window_bounds = array<i64: 16, 32>}, {pipeline_mode = #tpu.pipeline_mode<synchronous>, transform_indices = @transform_2, window_bounds = array<i64: 16, 1>}, {pipeline_mode = #tpu.pipeline_mode<synchronous>, transform_indices = @transform_3, window_bounds = array<i64: 16, 16>}, {pipeline_mode = #tpu.pipeline_mode<synchronous>, transform_indices = @transform_4, window_bounds = array<i64: 16, 1>}, {transform_indices = @transform_5, window_bounds = array<i64: 16, 128>}]} {
    %c0 = arith.constant 0 : index
    %c0_0 = arith.constant 0 : index
    %0 = vector.load %arg2[%c0, %c0_0] : memref<16x32xf32, #tpu.memory_space<vmem>>, vector<16x32xf32>
    %c0_1 = arith.constant 0 : index
    %c0_2 = arith.constant 0 : index
    %1 = vector.load %arg1[%c0_1, %c0_2] : memref<128x32xf32, #tpu.memory_space<vmem>>, vector<128x32xf32>
    %cst = arith.constant dense<0.000000e+00> : vector<16x128xf32>
    %2 = tpu.matmul %0, %1, %cst {dimension_numbers = #tpu.dot_dimension_numbers<[1], [1], [0], [0], [0, 0, 1, 0], [], []>} : vector<16x32xf32>, vector<128x32xf32>, vector<16x128xf32> -> vector<16x128xf32>
    %c0_3 = arith.constant 0 : index
    %c0_4 = arith.constant 0 : index
    %3 = vector.load %arg3[%c0_3, %c0_4] : memref<16x1xf32, #tpu.memory_space<vmem>>, vector<16x1xf32>
    %4 = vector.broadcast %3 : vector<16x1xf32> to vector<16x128xf32>
    %5 = arith.addf %2, %4 : vector<16x128xf32>
    %cst_5 = arith.constant 0.000000e+00 : f32
    %6 = vector.broadcast %cst_5 : f32 to vector<16x128xf32>
    %7 = arith.maximumf %5, %6 : vector<16x128xf32>
    %c0_6 = arith.constant 0 : index
    %c0_7 = arith.constant 0 : index
    %8 = vector.load %arg4[%c0_6, %c0_7] : memref<16x16xf32, #tpu.memory_space<vmem>>, vector<16x16xf32>
    %cst_8 = arith.constant dense<0.000000e+00> : vector<16x128xf32>
    %9 = tpu.matmul %8, %7, %cst_8 {dimension_numbers = #tpu.dot_dimension_numbers<[1], [0], [0], [1], [0, 0, 1, 1], [], []>} : vector<16x16xf32>, vector<16x128xf32>, vector<16x128xf32> -> vector<16x128xf32>
    %c0_9 = arith.constant 0 : index
    %c0_10 = arith.constant 0 : index
    %10 = vector.load %arg5[%c0_9, %c0_10] : memref<16x1xf32, #tpu.memory_space<vmem>>, vector<16x1xf32>
    %11 = vector.broadcast %10 : vector<16x1xf32> to vector<16x128xf32>
    %12 = arith.addf %9, %11 : vector<16x128xf32>
    %cst_11 = arith.constant 0.000000e+00 : f32
    %13 = vector.broadcast %cst_11 : f32 to vector<16x128xf32>
    %14 = arith.maximumf %12, %13 : vector<16x128xf32>
    %c0_12 = arith.constant 0 : index
    %c0_13 = arith.constant 0 : index
    %15 = vector.load %arg6[%c0_12, %c0_13] : memref<16x128xf32, #tpu.memory_space<vmem>>, vector<16x128xf32>
    tpu.vector_store %arg6[%c0_12, %c0_13], %14 {strides = array<i32>} : memref<16x128xf32, #tpu.memory_space<vmem>>, vector<16x128xf32>,
    return
  }
  func.func @transform_0(%arg0: i32) -> (i32, i32) {
    %c0_i32 = arith.constant 0 : i32
    %c0_i32_0 = arith.constant 0 : i32
    return %arg0, %c0_i32 : i32, i32
  }
  func.func @transform_1(%arg0: i32) -> (i32, i32) {
    %c0_i32 = arith.constant 0 : i32
    %c0_i32_0 = arith.constant 0 : i32
    %c0_i32_1 = arith.constant 0 : i32
    return %c0_i32, %c0_i32_0 : i32, i32
  }
  func.func @transform_2(%arg0: i32) -> (i32, i32) {
    %c0_i32 = arith.constant 0 : i32
    %c0_i32_0 = arith.constant 0 : i32
    %c0_i32_1 = arith.constant 0 : i32
    return %c0_i32, %c0_i32_0 : i32, i32
  }
  func.func @transform_3(%arg0: i32) -> (i32, i32) {
    %c0_i32 = arith.constant 0 : i32
    %c0_i32_0 = arith.constant 0 : i32
    %c0_i32_1 = arith.constant 0 : i32
    return %c0_i32, %c0_i32_0 : i32, i32
  }
  func.func @transform_4(%arg0: i32) -> (i32, i32) {
    %c0_i32 = arith.constant 0 : i32
    %c0_i32_0 = arith.constant 0 : i32
    %c0_i32_1 = arith.constant 0 : i32
    return %c0_i32, %c0_i32_0 : i32, i32
  }
  func.func @transform_5(%arg0: i32) -> (i32, i32) {
    %c0_i32 = arith.constant 0 : i32
    %c0_i32_0 = arith.constant 0 : i32
    return %c0_i32, %arg0 : i32, i32
  }
}

</mosaic_0001>

<bundles_post_ra>
// kernel: tpu_custom_call.1
= control target key start
LH: loop header
LB: loop body
LE: loop exit
PB: predicated region body
PF: predicated region fallthrough
CT: control target
= control target key end

     0   :  { %10 = vsyncpa [#allocation3], 0  ;;  %s598_s0 = inlined_call_operand.vmem [shape: f32[16,32], index: 0, kind: input, shape index: {}]   ;;  %s599_s1 = inlined_call_operand.vmem [shape: f32[16,32], index: 1, kind: input, shape index: {}]   ;;  %s600_s2 = inlined_call_operand.vmem [shape: f32[16,1], index: 2, kind: input, shape index: {}]   ;;  %s601_s3 = inlined_call_operand.hbm [shape: f32[16,16], index: 3, kind: input, shape index: {}]   ;;  %s602_s4 = inlined_call_operand.vmem [shape: f32[16,1], index: 4, kind: input, shape index: {}]   ;;  %s603_s5 = inlined_call_operand.hbm [shape: f32[16,16], index: 5, kind: output, shape index: {}]  }
   0x1   :  { %11 = vsyncpa [#allocation4], 0  ;;  %s449_s18 = smov [#allocation2]  }
   0x2   :  { %s23_s19 = sshll.u32 %s449_s18, 4  ;;  %s24_s19 = int_to_ptr.vmem [resolvable:$true] %s23_s19 }
   0x3   :  { %s413_s20 = scalar_lea.vmem %s24_s19, 256  ;;  %p418_p1 = scmp.lt.s32.totalorder %s24_s19, %s24_s19 }
   0x4   :  { %p414_p0 = scmp.ne.s32.totalorder %s24_s19, %s413_s20  ;;  %p419_p2 = scmp.lt.s32.totalorder %s413_s20, %s413_s20 }
   0x6   :  { %p420_p3 = por %p419_p2, %p418_p1 }
   0x8   :  { %p421_p4 = pnand %p420_p3, %p414_p0 }
   0xa   :  { %424 = shalt.err (!%p421_p4)
}
   0xb   :  { %s450_s21 = smov 128   ;;  %s451_s22 = smov 8  }
   0xc   :  { %29 = dma.hbm_to_vmem [thread:$0]  %s601_s3, 256, %s24_s19, [#allocation3], %s450_s21, %s450_s21, %s451_s22  }
   0xd   :  { %445 = dma.done.wait [#allocation3], 256  }
   0xe   :  { %446 = vsyncadd [#allocation3], 4294967040  ;;  %v452_v0 = vmov 0   ;;  %vm65_vm0 = vcmask 261120   ;;  %v52_v1 = vld [vmem:[%s598_s0 + $0x78] sm:$0xff]  ;;  %v51_v2 = vld [vmem:[%s598_s0 + $0x70] sm:$0xff] }
   0xf   :  { %403 = vset.pattern.permute.xlu0 %v452_v0  ;;  %404 = vset.pattern.permute.xlu1 %v452_v0  ;;  %v50_v3 = vld [vmem:[%s598_s0 + $0x68] sm:$0xff]  ;;  %v35_v4 = vld [vmem:[%s599_s1] sm:$0xff]  ;;  %v48_v8 = vld [vmem:[%s598_s0 + $0x58] sm:$0xff]  ;;  %vm211_vm1 = vcmask 130048  }
  0x10   :  { %356 = vmatprep.subr.msk.mxu0 %vm65_vm0, %v52_v1  ;;  %388 = vmatprep.mubr.msk.f32.mxu0 %vm65_vm0, %v35_v4  ;;  %v54_v5 = vld [vmem:[%s600_s2 + $0x8] sm:$0xff]  ;;  %v49_v6 = vld [vmem:[%s598_s0 + $0x60] sm:$0xff]  ;;  %v47_v9 = vld [vmem:[%s598_s0 + $0x50] sm:$0xff] }
  0x11   :  { %357 = vmatpush3.xpose.msk.msra.mxu0 %vm65_vm0, %v52_v1  ;;  %62 = vperm.xlu0 %403, %v54_v5   ;;  %v53_v7 = vld [vmem:[%s600_s2] sm:$0xff]  ;;  %v46_v10 = vld [vmem:[%s598_s0 + $0x48] sm:$0xff]  ;;  %v44_v12 = vld [vmem:[%s598_s0 + $0x38] sm:$0xff] }
  0x12   :  { %358 = vmatprep.subr.msk.mxu0 %vm65_vm0, %v51_v2  ;;  %v45_v11 = vld [vmem:[%s598_s0 + $0x40] sm:$0xff]  ;;  %v43_v13 = vld [vmem:[%s598_s0 + $0x30] sm:$0xff]  ;;  %v42_v14 = vld [vmem:[%s598_s0 + $0x28] sm:$0xff] }
  0x13   :  { %v41_v15 = vld [vmem:[%s598_s0 + $0x20] sm:$0xff]  ;;  %v40_v16 = vld [vmem:[%s598_s0 + $0x18] sm:$0xff]  ;;  %v39_v17 = vld [vmem:[%s598_s0 + $0x10] sm:$0xff] }
  0x14   :  { %v38_v18 = vld [vmem:[%s598_s0 + $0x8] sm:$0xff]  ;;  %v37_v19 = vld [vmem:[%s598_s0] sm:$0xff] }
  0x15   :  { %359 = vmatpush3.xpose.msk.msra.mxu0 %vm65_vm0, %v51_v2  ;;  %57 = vperm.xlu0 %403, %v53_v7   ;;  %v36_v20 = vld [vmem:[%s599_s1 + $0x8] sm:$0xff]  ;;  %v197_v21 = vld [vmem:[#allocation2] sm:$0xff]  ;;  %s453_s1 = smov [#allocation5]  }
  0x16   :  { %360 = vmatprep.subr.msk.mxu0 %vm65_vm0, %v50_v3  ;;  %395 = vmatprep.mubr.msk.f32.mxu1 %vm211_vm1, %v197_v21  ;;  %v199_v22 = vld [vmem:[%s602_s4] sm:$0xff]  ;;  %v200_v23 = vld [vmem:[%s602_s4 + $0x8] sm:$0xff]  ;;  %s302_s4 = sshll.u32 %s453_s1, 4  ;;  %s303_s4 = int_to_ptr.vmem [resolvable:$true] %s302_s4 }
  0x17   :  { %203 = vperm.xlu1 %404, %v199_v22   ;;  %v198_v32 = vld [vmem:[#allocation2 + $0x8] sm:$0xff]  ;;  %s425_s2 = scalar_lea.vmem %s303_s4, 256  ;;  %p430_p6 = scmp.lt.s32.totalorder %s303_s4, %s303_s4 }
  0x18   :  { %p426_p5 = scmp.ne.s32.totalorder %s303_s4, %s425_s2  ;;  %p431_p7 = scmp.lt.s32.totalorder %s425_s2, %s425_s2 }
  0x19   :  { %361 = vmatpush3.xpose.msk.msra.mxu0 %vm65_vm0, %v50_v3 }
  0x1a   :  { %362 = vmatprep.subr.msk.mxu0 %vm65_vm0, %v49_v6  ;;  %p432_p8 = por %p431_p7, %p430_p6 }
  0x1b   :  { %208 = vperm.xlu1 %404, %v200_v23  }
  0x1c   :  { %p433_p9 = pnand %p432_p8, %p426_p5 }
  0x1d   :  { %363 = vmatpush3.xpose.msk.msra.mxu0 %vm65_vm0, %v49_v6 }
  0x1e   :  { %364 = vmatprep.subr.msk.mxu0 %vm65_vm0, %v48_v8 }
  0x21   :  { %365 = vmatpush3.xpose.msk.msra.mxu0 %vm65_vm0, %v48_v8 }
  0x22   :  { %366 = vmatprep.subr.msk.mxu0 %vm65_vm0, %v47_v9 }
  0x25   :  { %367 = vmatpush3.xpose.msk.msra.mxu0 %vm65_vm0, %v47_v9 }
  0x26   :  { %368 = vmatprep.subr.msk.mxu0 %vm65_vm0, %v46_v10 }
  0x29   :  { %369 = vmatpush3.xpose.msk.msra.mxu0 %vm65_vm0, %v46_v10 }
  0x2a   :  { %370 = vmatprep.subr.msk.mxu0 %vm65_vm0, %v45_v11 }
  0x2d   :  { %371 = vmatpush3.xpose.msk.msra.mxu0 %vm65_vm0, %v45_v11 }
  0x2e   :  { %372 = vmatprep.subr.msk.mxu0 %vm65_vm0, %v44_v12 }
  0x31   :  { %373 = vmatpush3.xpose.msk.msra.mxu0 %vm65_vm0, %v44_v12 }
  0x32   :  { %374 = vmatprep.subr.msk.mxu0 %vm65_vm0, %v43_v13 }
  0x35   :  { %375 = vmatpush3.xpose.msk.msra.mxu0 %vm65_vm0, %v43_v13 }
  0x36   :  { %376 = vmatprep.subr.msk.mxu0 %vm65_vm0, %v42_v14 }
  0x39   :  { %377 = vmatpush3.xpose.msk.msra.mxu0 %vm65_vm0, %v42_v14 }
  0x3a   :  { %378 = vmatprep.subr.msk.mxu0 %vm65_vm0, %v41_v15 }
  0x3d   :  { %379 = vmatpush3.xpose.msk.msra.mxu0 %vm65_vm0, %v41_v15 }
  0x3e   :  { %380 = vmatprep.subr.msk.mxu0 %vm65_vm0, %v40_v16 }
  0x41   :  { %381 = vmatpush3.xpose.msk.msra.mxu0 %vm65_vm0, %v40_v16 }
  0x42   :  { %382 = vmatprep.subr.msk.mxu0 %vm65_vm0, %v39_v17 }
  0x45   :  { %383 = vmatpush3.xpose.msk.msra.mxu0 %vm65_vm0, %v39_v17 }
  0x46   :  { %384 = vmatprep.subr.msk.mxu0 %vm65_vm0, %v38_v18 }
  0x49   :  { %385 = vmatpush3.xpose.msk.msra.mxu0 %vm65_vm0, %v38_v18 }
  0x4a   :  { %386 = vmatprep.subr.msk.mxu0 %vm65_vm0, %v37_v19 }
  0x4d   :  { %387 = vmatpush3.xpose.msk.msra.mxu0 %vm65_vm0, %v37_v19 }
  0x50   :  { %389 = vmatmul.mubr.msk.f32.vlgmr.msra.gmra.mxu0 %vm65_vm0, %v36_v20 }
  0x8c   :  { %v63_v24 = vpop.permute.xlu0 %62 }
  0x90   :  { %v58_v27 = vpop.permute.xlu0 %57 }
  0x92   :  { %v204_v33 = vpop.permute.xlu1 %203 }
  0x96   :  { %v209_v34 = vpop.permute.xlu1 %208 }
 0x110   :  { %v390_v25 = vpop.f32.mrf.mxu0 }
 0x111   :  { %v192_v26 = vadd.f32 %v390_v25, %v63_v24 }
 0x112   :  { %v186_v28 = vpop.f32.mrf.mxu0 }
 0x113   :  { %v196_v29 = vmax.f32 %v192_v26, 0.0  ;;  %v187_v30 = vadd.f32 %v186_v28, %v58_v27 }
 0x115   :  { %v195_v31 = vmax.f32 %v187_v30, 0.0  ;;  %391 = vmatprep.subr.mxu1 %v196_v29 }
 0x116   :  { %392 = vmatpush3.msra.mxu1 %v196_v29 }
 0x117   :  { %393 = vmatprep.subr.mxu1 %v195_v31 }
 0x118   :  { %394 = vmatpush3.msra.mxu1 %v195_v31 }
 0x119   :  { %396 = vmatmul.mubr.msk.f32.vlgmr.msra.gmra.mxu1 %vm211_vm1, %v198_v32 }
 0x1d9   :  { %v397_v35 = vpop.f32.mrf.mxu1 }
 0x1da   :  { %v290_v36 = vadd.f32 %v397_v35, %v209_v34 }
 0x1db   :  { %v284_v37 = vpop.f32.mrf.mxu1 }
 0x1dc   :  { %v294_v38 = vmax.f32 %v290_v36, 0.0  ;;  %v285_v39 = vadd.f32 %v284_v37, %v204_v33 }
 0x1de   :  { %296 = vst [vmem:[#allocation5 + $0x8] sm:$0xff] %v294_v38  ;;  %v293_v40 = vmax.f32 %v285_v39, 0.0 }
 0x1e0   :  { %295 = vst [vmem:[#allocation5] sm:$0xff] %v293_v40 }
 0x1e1   :  { %436 = shalt.err (!%p433_p9)
}
 0x1e2   :  { %308 = dma.vmem_to_hbm [thread:$0]  %s303_s4, 256, %s603_s5, [#allocation4], %s450_s21, %s450_s21, %s451_s22  }
 0x1e3   :  { %447 = dma.done.wait [#allocation4], 256  }
 0x1e4   :  { %448 = vsyncadd [#allocation4], 4294967040 }
 0x1e5   :  { %312 = vsyncpa [#allocation3], 1 }
 0x1e6   :  { %313 = vsyncpa [#allocation4], 1 }

</bundles_post_ra>
